<compile_context>
chip_gen: v7x
topology: tpu7x:2x2x1
jax: 0.10.0
libtpu: 0.0.40
codegen_flags: <defaults>
</compile_context>

<pallas_src>
import functools

import jax
import jax.numpy as jnp
import numpy as np
from jax.experimental import pallas as pl
from jax.experimental.pallas import tpu as pltpu


def _round_up(n: int, m: int) -> int:
    return ((n + m - 1) // m) * m


def _cdiv(a: int, b: int) -> int:
    return -(-a // b)


def _default_pack() -> int:
    """Row-packing factor: 2 on v5e (128-wide MXU), 4 on v6e/v7x (256-wide)."""
    try:
        kind = jax.devices()[0].device_kind.lower()
    except Exception:
        return 4
    if "v5 lite" in kind or "v5lite" in kind or "v5e" in kind:
        return 2
    return 4


def _make_dense_kernel(n_layers: int, out_nonlinearity: bool):
    """Fused MLP kernel body for `n_layers` Linear layers.

    Matmul inputs are in the weights' (compute) dtype, accumulation is f32 via
    preferred_element_type, bias-add is f32, and intermediates are downcast to
    the compute dtype right after the ReLU (bit-identical, fewer spill bytes).
    """

    def kernel(*refs):
        x_ref = refs[0]
        param_refs = refs[1 : 1 + 2 * n_layers]
        o_ref = refs[1 + 2 * n_layers]

        h = x_ref[...]  # stored dtype (f32); cast happens per-layer below
        for j in range(n_layers):
            w = param_refs[2 * j][...]          # compute dtype (bf16 or f32)
            b = param_refs[2 * j + 1][...]      # f32
            acc = jnp.dot(h.astype(w.dtype), w,
                          preferred_element_type=jnp.float32)
            h = acc + b                         # f32 epilogue
            if j != n_layers - 1:
                # ReLU then early downcast: the carried intermediate is narrow.
                h = jnp.maximum(h, 0.0).astype(w.dtype)
        if out_nonlinearity:
            h = jnp.maximum(h, 0.0)
        o_ref[...] = h.astype(o_ref.dtype)

    return kernel


@functools.partial(
    jax.jit,
    static_argnames=("block_rows", "out_nonlinearity", "compute_dtype", "pack"),
)
def dense_net_forward(x, weights, biases, *, block_rows=8192,
                      out_nonlinearity=False, compute_dtype=jnp.bfloat16,
                      pack=None):
    """Fused DenseNet forward.

    x:       (N, layers[0])         float32
    weights: tuple of (D_in, D_out) float32, one per Linear layer
    biases:  tuple of (1, D_out)    float32, one per Linear layer
    returns: (N, layers[-1])        same dtype as x
    """
    n_layers = len(weights)
    N, d_in = x.shape
    d_out = int(weights[-1].shape[1])
    out_dtype = x.dtype

    P = int(pack) if pack is not None else _default_pack()

    # ---- Row packing (wrapper only; kernel math unchanged) ------------------
    # Pad only if N is not a multiple of P (at most P-1 rows).
    n_pad = _round_up(N, P)
    xp = x if n_pad == N else jnp.pad(x, ((0, n_pad - N), (0, 0)))
    rows = n_pad // P
    xp = xp.reshape(rows, d_in * P)  # bit-identical row-major reshape (no copy)

    wp, bp = [], []
    for w, b in zip(weights, biases):
        wp.append(jax.scipy.linalg.block_diag(*([w] * P)).astype(compute_dtype))
        bp.append(jnp.tile(b.reshape(1, -1), (1, P)).astype(jnp.float32))

    d_in_p, d_out_p = d_in * P, d_out * P

    # ---- Batch tile in packed rows ------------------------------------------
    br = max(8, ((int(block_rows) // P) // 8) * 8)
    br = min(br, _round_up(rows, 8))
    if rows > 8:
        # Keep >= 2 grid steps so both v7x TensorCores get work.
        br = min(br, _round_up((rows + 1) // 2, 8))
    grid = _cdiv(rows, br)  # ragged tail handled by Pallas edge blocks

    kernel = _make_dense_kernel(n_layers, out_nonlinearity)

    # Activations tiled over packed rows; every weight/bias block is the full
    # (tiny) array with a constant index map -> DMA'd once, resident in VMEM.
    in_specs = [pl.BlockSpec((br, d_in_p), lambda i: (i, 0))]
    operands = [xp]
    for w, b in zip(wp, bp):
        in_specs.append(pl.BlockSpec(w.shape, lambda i: (0, 0)))
        in_specs.append(pl.BlockSpec(b.shape, lambda i: (0, 0)))
        operands.append(w)
        operands.append(b)
    out_spec = pl.BlockSpec((br, d_out_p), lambda i: (i, 0))

    # ---- VMEM budget: double-buffered in/out tiles + params + intermediate
    #      activation scratch, with headroom (safe under v7x's 64 MiB VMEM).
    item_c = jnp.dtype(compute_dtype).itemsize
    item_o = jnp.dtype(out_dtype).itemsize
    param_bytes = sum(int(np.prod(w.shape)) * item_c for w in wp) + \
                  sum(int(np.prod(b.shape)) * 4 for b in bp)
    d_max_p = max([d_in_p] + [int(w.shape[1]) for w in wp])
    in_tile = br * d_in_p * jnp.dtype(x.dtype).itemsize
    out_tile = br * d_out_p * item_o
    inter_scratch = 3 * br * d_max_p * 4   # spilled f32/bf16 intermediates
    vmem_limit = 2 * (in_tile + out_tile) + param_bytes + inter_scratch + (8 << 20)
    vmem_limit = int(min(max(vmem_limit, 16 << 20), 50 << 20))

    flops = 2 * rows * sum(int(w.shape[0]) * int(w.shape[1]) for w in wp)
    bytes_accessed = rows * d_in_p * jnp.dtype(x.dtype).itemsize \
        + rows * d_out_p * item_o + param_bytes
    cost = pl.CostEstimate(flops=int(flops), transcendentals=0,
                           bytes_accessed=int(bytes_accessed))

    out = pl.pallas_call(
        kernel,
        out_shape=jax.ShapeDtypeStruct((rows, d_out_p), out_dtype),
        grid_spec=pltpu.PrefetchScalarGridSpec(
            num_scalar_prefetch=0,
            grid=(grid,),
            in_specs=in_specs,
            out_specs=out_spec,
        ),
        compiler_params=pltpu.CompilerParams(
            dimension_semantics=("parallel",),
            vmem_limit_bytes=vmem_limit,
        ),
        cost_estimate=cost,
    )(*operands)

    # Bit-identical row-major un-packing, then drop padded rows (if any).
    out = out.reshape(rows * P, d_out)
    return out[:N] if n_pad != N else out


def init_dense_net_params(key, layers):
    """Deterministic init mimicking nn.Linear's uniform(-1/sqrt(fan_in), +)."""
    weights, biases = [], []
    for j in range(len(layers) - 1):
        fan_in, fan_out = layers[j], layers[j + 1]
        key, kw, kb = jax.random.split(key, 3)
        bound = 1.0 / np.sqrt(fan_in)
        w = jax.random.uniform(kw, (fan_in, fan_out), jnp.float32, -bound, bound)
        b = jax.random.uniform(kb, (1, fan_out), jnp.float32, -bound, bound)
        weights.append(w)
        biases.append(b)
    return tuple(weights), tuple(biases)


def dense_net_reference(x, weights, biases, out_nonlinearity=False):
    h = x
    n = len(weights)
    for j, (w, b) in enumerate(zip(weights, biases)):
        h = h @ w + b
        if j != n - 1:
            h = jnp.maximum(h, 0.0)
    if out_nonlinearity:
        h = jnp.maximum(h, 0.0)
    return h


if __name__ == "__main__":
    # DenseNet(layers=[32, 64, 64, 16], nonlinearity=nn.ReLU)
    layers = [32, 64, 64, 16]

    key = jax.random.PRNGKey(0)
    key, kx = jax.random.split(key)
    weights, biases = init_dense_net_params(key, layers)

    # 1) Small batch, f32 compute path: exact check (single tile).
    x1 = jax.random.normal(kx, (32, layers[0]), dtype=jnp.float32)
    out1 = jax.block_until_ready(
        dense_net_forward(x1, weights, biases, compute_dtype=jnp.float32))
    ref1 = dense_net_reference(x1, weights, biases)
    np.testing.assert_allclose(np.asarray(out1), np.asarray(ref1),
                               rtol=1e-5, atol=1e-5)

    # 2) Ragged batch (200 rows, small tiles -> several grid steps including a
    #    partial edge tile), bf16 matmul inputs with f32 accumulation.
    key, kx2 = jax.random.split(key)
    x2 = jax.random.normal(kx2, (200, layers[0]), dtype=jnp.float32)
    out2 = jax.block_until_ready(
        dense_net_forward(x2, weights, biases, block_rows=64,
                          compute_dtype=jnp.bfloat16))
    ref2 = dense_net_reference(x2, weights, biases)
    assert out2.shape == ref2.shape
    np.testing.assert_allclose(np.asarray(out2), np.asarray(ref2),
                               rtol=3e-2, atol=3e-2)

    # 3) Batch not divisible by the packing factor (exercises pad/slice path).
    key, kx3 = jax.random.split(key)
    x3 = jax.random.normal(kx3, (37, layers[0]), dtype=jnp.float32)
    out3 = jax.block_until_ready(
        dense_net_forward(x3, weights, biases, compute_dtype=jnp.float32))
    ref3 = dense_net_reference(x3, weights, biases)
    np.testing.assert_allclose(np.asarray(out3), np.asarray(ref3),
                               rtol=1e-5, atol=1e-5)

    print("KERNEL_OK")
</pallas_src>

<mosaic_0001>
module attributes {stable_mosaic.version = 11 : i64} {
  func.func @kernel(%arg0: i32, %arg1: memref<8x128xf32, #tpu.memory_space<vmem>>, %arg2: memref<128x256xf32, #tpu.memory_space<vmem>>, %arg3: memref<1x256xf32, #tpu.memory_space<vmem>>, %arg4: memref<256x256xf32, #tpu.memory_space<vmem>>, %arg5: memref<1x256xf32, #tpu.memory_space<vmem>>, %arg6: memref<256x64xf32, #tpu.memory_space<vmem>>, %arg7: memref<1x64xf32, #tpu.memory_space<vmem>>, %arg8: memref<8x64xf32, #tpu.memory_space<vmem>>) attributes {dimension_semantics = [#tpu.dimension_semantics<parallel>], iteration_bounds = array<i64: 1>, scalar_prefetch = 0 : i64, scratch_operands = 0 : i64, tpu.core_type = #tpu.core_type<tc>, window_params = [{transform_indices = @transform_0, window_bounds = array<i64: 8, 128>}, {pipeline_mode = #tpu.pipeline_mode<synchronous>, transform_indices = @transform_1, window_bounds = array<i64: 128, 256>}, {pipeline_mode = #tpu.pipeline_mode<synchronous>, transform_indices = @transform_2, window_bounds = array<i64: 1, 256>}, {pipeline_mode = #tpu.pipeline_mode<synchronous>, transform_indices = @transform_3, window_bounds = array<i64: 256, 256>}, {pipeline_mode = #tpu.pipeline_mode<synchronous>, transform_indices = @transform_4, window_bounds = array<i64: 1, 256>}, {pipeline_mode = #tpu.pipeline_mode<synchronous>, transform_indices = @transform_5, window_bounds = array<i64: 256, 64>}, {pipeline_mode = #tpu.pipeline_mode<synchronous>, transform_indices = @transform_6, window_bounds = array<i64: 1, 64>}, {transform_indices = @transform_7, window_bounds = array<i64: 8, 64>}]} {
    %c0 = arith.constant 0 : index
    %c0_0 = arith.constant 0 : index
    %0 = vector.load %arg1[%c0, %c0_0] : memref<8x128xf32, #tpu.memory_space<vmem>>, vector<8x128xf32>
    %c0_1 = arith.constant 0 : index
    %c0_2 = arith.constant 0 : index
    %1 = vector.load %arg2[%c0_1, %c0_2] : memref<128x256xf32, #tpu.memory_space<vmem>>, vector<128x256xf32>
    %c0_3 = arith.constant 0 : index
    %c0_4 = arith.constant 0 : index
    %2 = vector.load %arg3[%c0_3, %c0_4] : memref<1x256xf32, #tpu.memory_space<vmem>>, vector<1x256xf32>
    %cst = arith.constant dense<0.000000e+00> : vector<8x256xf32>
    %3 = tpu.matmul %0, %1, %cst {dimension_numbers = #tpu.dot_dimension_numbers<[1], [0], [0], [1], [0, 0, 1, 1], [], []>} : vector<8x128xf32>, vector<128x256xf32>, vector<8x256xf32> -> vector<8x256xf32>
    %4 = vector.broadcast %2 : vector<1x256xf32> to vector<8x256xf32>
    %5 = arith.addf %3, %4 : vector<8x256xf32>
    %cst_5 = arith.constant 0.000000e+00 : f32
    %6 = vector.broadcast %cst_5 : f32 to vector<8x256xf32>
    %7 = arith.maximumf %5, %6 : vector<8x256xf32>
    %c0_6 = arith.constant 0 : index
    %c0_7 = arith.constant 0 : index
    %8 = vector.load %arg4[%c0_6, %c0_7] : memref<256x256xf32, #tpu.memory_space<vmem>>, vector<256x256xf32>
    %c0_8 = arith.constant 0 : index
    %c0_9 = arith.constant 0 : index
    %9 = vector.load %arg5[%c0_8, %c0_9] : memref<1x256xf32, #tpu.memory_space<vmem>>, vector<1x256xf32>
    %cst_10 = arith.constant dense<0.000000e+00> : vector<8x256xf32>
    %10 = tpu.matmul %7, %8, %cst_10 {dimension_numbers = #tpu.dot_dimension_numbers<[1], [0], [0], [1], [0, 0, 1, 1], [], []>} : vector<8x256xf32>, vector<256x256xf32>, vector<8x256xf32> -> vector<8x256xf32>
    %11 = vector.broadcast %9 : vector<1x256xf32> to vector<8x256xf32>
    %12 = arith.addf %10, %11 : vector<8x256xf32>
    %cst_11 = arith.constant 0.000000e+00 : f32
    %13 = vector.broadcast %cst_11 : f32 to vector<8x256xf32>
    %14 = arith.maximumf %12, %13 : vector<8x256xf32>
    %c0_12 = arith.constant 0 : index
    %c0_13 = arith.constant 0 : index
    %15 = vector.load %arg6[%c0_12, %c0_13] : memref<256x64xf32, #tpu.memory_space<vmem>>, vector<256x64xf32>
    %c0_14 = arith.constant 0 : index
    %c0_15 = arith.constant 0 : index
    %16 = vector.load %arg7[%c0_14, %c0_15] : memref<1x64xf32, #tpu.memory_space<vmem>>, vector<1x64xf32>
    %cst_16 = arith.constant dense<0.000000e+00> : vector<8x64xf32>
    %17 = tpu.matmul %14, %15, %cst_16 {dimension_numbers = #tpu.dot_dimension_numbers<[1], [0], [0], [1], [0, 0, 1, 1], [], []>} : vector<8x256xf32>, vector<256x64xf32>, vector<8x64xf32> -> vector<8x64xf32>
    %18 = vector.broadcast %16 : vector<1x64xf32> to vector<8x64xf32>
    %19 = arith.addf %17, %18 : vector<8x64xf32>
    %c0_17 = arith.constant 0 : index
    %c0_18 = arith.constant 0 : index
    %20 = vector.load %arg8[%c0_17, %c0_18] : memref<8x64xf32, #tpu.memory_space<vmem>>, vector<8x64xf32>
    tpu.vector_store %arg8[%c0_17, %c0_18], %19 {strides = array<i32>} : memref<8x64xf32, #tpu.memory_space<vmem>>, vector<8x64xf32>,
    return
  }
  func.func @transform_0(%arg0: i32) -> (i32, i32) {
    %c0_i32 = arith.constant 0 : i32
    %c0_i32_0 = arith.constant 0 : i32
    return %arg0, %c0_i32 : i32, i32
  }
  func.func @transform_1(%arg0: i32) -> (i32, i32) {
    %c0_i32 = arith.constant 0 : i32
    %c0_i32_0 = arith.constant 0 : i32
    %c0_i32_1 = arith.constant 0 : i32
    return %c0_i32, %c0_i32_0 : i32, i32
  }
  func.func @transform_2(%arg0: i32) -> (i32, i32) {
    %c0_i32 = arith.constant 0 : i32
    %c0_i32_0 = arith.constant 0 : i32
    %c0_i32_1 = arith.constant 0 : i32
    return %c0_i32, %c0_i32_0 : i32, i32
  }
  func.func @transform_3(%arg0: i32) -> (i32, i32) {
    %c0_i32 = arith.constant 0 : i32
    %c0_i32_0 = arith.constant 0 : i32
    %c0_i32_1 = arith.constant 0 : i32
    return %c0_i32, %c0_i32_0 : i32, i32
  }
  func.func @transform_4(%arg0: i32) -> (i32, i32) {
    %c0_i32 = arith.constant 0 : i32
    %c0_i32_0 = arith.constant 0 : i32
    %c0_i32_1 = arith.constant 0 : i32
    return %c0_i32, %c0_i32_0 : i32, i32
  }
  func.func @transform_5(%arg0: i32) -> (i32, i32) {
    %c0_i32 = arith.constant 0 : i32
    %c0_i32_0 = arith.constant 0 : i32
    %c0_i32_1 = arith.constant 0 : i32
    return %c0_i32, %c0_i32_0 : i32, i32
  }
  func.func @transform_6(%arg0: i32) -> (i32, i32) {
    %c0_i32 = arith.constant 0 : i32
    %c0_i32_0 = arith.constant 0 : i32
    %c0_i32_1 = arith.constant 0 : i32
    return %c0_i32, %c0_i32_0 : i32, i32
  }
  func.func @transform_7(%arg0: i32) -> (i32, i32) {
    %c0_i32 = arith.constant 0 : i32
    %c0_i32_0 = arith.constant 0 : i32
    return %arg0, %c0_i32 : i32, i32
  }
}

</mosaic_0001>

<bundles_post_ra>
// kernel: dense_net_forward.1
= control target key start
LH: loop header
LB: loop body
LE: loop exit
PB: predicated region body
PF: predicated region fallthrough
CT: control target
= control target key end

     0   :  { %v573_v3 = vmov 0.0   ;;  %vm402_vm0 = vcmask 523264   ;;  %s1013_s1 = inlined_call_operand.vmem [shape: f32[128,256], index: 1, kind: input, shape index: {}]   ;;  %s1014_s3 = inlined_call_operand.vmem [shape: f32[256,256], index: 3, kind: input, shape index: {}]   ;;  %s1015_s0 = inlined_call_operand.vmem [shape: f32[8,128], index: 0, kind: input, shape index: {}]   ;;  %s1016_s5 = inlined_call_operand.vmem [shape: f32[256,64], index: 5, kind: input, shape index: {}]   ;;  %s1017_s2 = inlined_call_operand.vmem [shape: f32[1,256], index: 2, kind: input, shape index: {}]   ;;  %s1018_s4 = inlined_call_operand.vmem [shape: f32[1,256], index: 4, kind: input, shape index: {}]   ;;  %s1019_s6 = inlined_call_operand.vmem [shape: f32[1,64], index: 6, kind: input, shape index: {}]   ;;  %s1020_s7 = inlined_call_operand.vmem [shape: f32[8,64], index: 7, kind: output, shape index: {}]  }
   0x1   :  { %v28_v0 = vld [vmem:[%s1013_s1 + $0x8] sm:$0xff]  ;;  %v30_v1 = vld [vmem:[%s1013_s1 + $0x18] sm:$0xff]  ;;  %v27_v2 = vld [vmem:[%s1013_s1] sm:$0xff]  ;;  %135 = vmatprep.mubr.f32.mxu0 %v573_v3 }
   0x2   :  { %v444_v4 = vpack.c.bf16 %v30_v1, %v28_v0  ;;  %v29_v5 = vld [vmem:[%s1013_s1 + $0x10] sm:$0xff]  ;;  %v32_v6 = vld [vmem:[%s1013_s1 + $0x28] sm:$0xff]  ;;  %v34_v7 = vld [vmem:[%s1013_s1 + $0x38] sm:$0xff] }
   0x3   :  { %v446_v8 = vpack.c.bf16 %v29_v5, %v27_v2  ;;  %v448_v9 = vpack.c.bf16 %v34_v7, %v32_v6  ;;  %v31_v10 = vld [vmem:[%s1013_s1 + $0x20] sm:$0xff]  ;;  %v33_v11 = vld [vmem:[%s1013_s1 + $0x30] sm:$0xff]  ;;  %v36_v12 = vld [vmem:[%s1013_s1 + $0x48] sm:$0xff] }
   0x4   :  { %445 = vmatprep.subr.bf16.mxu0 %v444_v4  ;;  %v38_v13 = vld [vmem:[%s1013_s1 + $0x58] sm:$0xff]  ;;  %v450_v14 = vpack.c.bf16 %v33_v11, %v31_v10  ;;  %v35_v16 = vld [vmem:[%s1013_s1 + $0x40] sm:$0xff]  ;;  %v37_v17 = vld [vmem:[%s1013_s1 + $0x50] sm:$0xff] }
   0x5   :  { %447 = vmatpush1.bf16.msra.mxu0 %v446_v8  ;;  %v452_v15 = vpack.c.bf16 %v38_v13, %v36_v12  ;;  %v40_v18 = vld [vmem:[%s1013_s1 + $0x68] sm:$0xff]  ;;  %v42_v19 = vld [vmem:[%s1013_s1 + $0x78] sm:$0xff]  ;;  %v454_v20 = vpack.c.bf16 %v37_v17, %v35_v16  ;;  %v39_v22 = vld [vmem:[%s1013_s1 + $0x60] sm:$0xff] }
   0x6   :  { %449 = vmatprep.subr.bf16.mxu0 %v448_v9  ;;  %v456_v21 = vpack.c.bf16 %v42_v19, %v40_v18  ;;  %v41_v23 = vld [vmem:[%s1013_s1 + $0x70] sm:$0xff]  ;;  %v44_v24 = vld [vmem:[%s1013_s1 + $0x88] sm:$0xff]  ;;  %v46_v25 = vld [vmem:[%s1013_s1 + $0x98] sm:$0xff] }
   0x7   :  { %v43_v26 = vld [vmem:[%s1013_s1 + $0x80] sm:$0xff]  ;;  %v45_v27 = vld [vmem:[%s1013_s1 + $0x90] sm:$0xff]  ;;  %v145_v28 = vld [vmem:[%s1014_s3 + $0x8] sm:$0xff]  ;;  %v458_v31 = vpack.c.bf16 %v41_v23, %v39_v22  ;;  %v460_v36 = vpack.c.bf16 %v46_v25, %v44_v24 }
   0x8   :  { %v147_v29 = vld [vmem:[%s1014_s3 + $0x18] sm:$0xff]  ;;  %v144_v30 = vld [vmem:[%s1014_s3] sm:$0xff]  ;;  %v146_v33 = vld [vmem:[%s1014_s3 + $0x10] sm:$0xff]  ;;  %v462_v46 = vpack.c.bf16 %v45_v27, %v43_v26 }
   0x9   :  { %451 = vmatpush1.bf16.msra.mxu0 %v450_v14  ;;  %v476_v32 = vpack.c.bf16 %v147_v29, %v145_v28  ;;  %v149_v34 = vld [vmem:[%s1014_s3 + $0x28] sm:$0xff]  ;;  %v151_v35 = vld [vmem:[%s1014_s3 + $0x38] sm:$0xff]  ;;  %v478_v37 = vpack.c.bf16 %v146_v33, %v144_v30  ;;  %v148_v39 = vld [vmem:[%s1014_s3 + $0x20] sm:$0xff] }
   0xa   :  { %453 = vmatprep.subr.bf16.mxu0 %v452_v15  ;;  %v480_v38 = vpack.c.bf16 %v151_v35, %v149_v34  ;;  %v150_v40 = vld [vmem:[%s1014_s3 + $0x30] sm:$0xff]  ;;  %v153_v41 = vld [vmem:[%s1014_s3 + $0x48] sm:$0xff]  ;;  %v50_v43 = vld [vmem:[%s1013_s1 + $0xb8] sm:$0xff] }
   0xb   :  { %v48_v42 = vld [vmem:[%s1013_s1 + $0xa8] sm:$0xff]  ;;  %477 = vmatprep.subr.bf16.mxu1 %v476_v32  ;;  %v155_v44 = vld [vmem:[%s1014_s3 + $0x58] sm:$0xff]  ;;  %v482_v45 = vpack.c.bf16 %v150_v40, %v148_v39  ;;  %v47_v47 = vld [vmem:[%s1013_s1 + $0xa0] sm:$0xff] }
   0xc   :  { %479 = vmatpush1.bf16.msra.mxu1 %v478_v37  ;;  %v484_v48 = vpack.c.bf16 %v155_v44, %v153_v41  ;;  %v152_v49 = vld [vmem:[%s1014_s3 + $0x40] sm:$0xff]  ;;  %v154_v50 = vld [vmem:[%s1014_s3 + $0x50] sm:$0xff]  ;;  %v464_v51 = vpack.c.bf16 %v50_v43, %v48_v42  ;;  %v157_v53 = vld [vmem:[%s1014_s3 + $0x68] sm:$0xff] }
   0xd   :  { %455 = vmatpush1.bf16.msra.mxu0 %v454_v20  ;;  %481 = vmatprep.subr.bf16.mxu1 %v480_v38  ;;  %v49_v52 = vld [vmem:[%s1013_s1 + $0xb0] sm:$0xff]  ;;  %v159_v54 = vld [vmem:[%s1014_s3 + $0x78] sm:$0xff]  ;;  %v52_v55 = vld [vmem:[%s1013_s1 + $0xc8] sm:$0xff]  ;;  %v486_v57 = vpack.c.bf16 %v154_v50, %v152_v49 }
   0xe   :  { %457 = vmatprep.subr.bf16.mxu0 %v456_v21  ;;  %v54_v56 = vld [vmem:[%s1013_s1 + $0xd8] sm:$0xff]  ;;  %v466_v58 = vpack.c.bf16 %v49_v52, %v47_v47  ;;  %v51_v59 = vld [vmem:[%s1013_s1 + $0xc0] sm:$0xff]  ;;  %v488_v60 = vpack.c.bf16 %v159_v54, %v157_v53  ;;  %v158_v62 = vld [vmem:[%s1014_s3 + $0x70] sm:$0xff] }
   0xf   :  { %v156_v61 = vld [vmem:[%s1014_s3 + $0x60] sm:$0xff]  ;;  %v468_v63 = vpack.c.bf16 %v54_v56, %v52_v55  ;;  %v53_v0 = vld [vmem:[%s1013_s1 + $0xd0] sm:$0xff]  ;;  %v161_v1 = vld [vmem:[%s1014_s3 + $0x88] sm:$0xff] }
  0x10   :  { %483 = vmatpush1.bf16.msra.mxu1 %v482_v45  ;;  %v163_v2 = vld [vmem:[%s1014_s3 + $0x98] sm:$0xff]  ;;  %v56_v3 = vld [vmem:[%s1013_s1 + $0xe8] sm:$0xff]  ;;  %v490_v5 = vpack.c.bf16 %v158_v62, %v156_v61  ;;  %v470_v6 = vpack.c.bf16 %v53_v0, %v51_v59  ;;  %v55_v7 = vld [vmem:[%s1013_s1 + $0xe0] sm:$0xff] }
  0x11   :  { %459 = vmatpush1.bf16.msra.mxu0 %v458_v31  ;;  %485 = vmatprep.subr.bf16.mxu1 %v484_v48  ;;  %v58_v4 = vld [vmem:[%s1013_s1 + $0xf8] sm:$0xff]  ;;  %v492_v8 = vpack.c.bf16 %v163_v2, %v161_v1  ;;  %v160_v9 = vld [vmem:[%s1014_s3 + $0x80] sm:$0xff]  ;;  %v162_v10 = vld [vmem:[%s1014_s3 + $0x90] sm:$0xff] }
  0x12   :  { %461 = vmatprep.subr.bf16.mxu0 %v460_v36  ;;  %v472_v11 = vpack.c.bf16 %v58_v4, %v56_v3  ;;  %v57_v12 = vld [vmem:[%s1013_s1 + $0xf0] sm:$0xff]  ;;  %v165_v13 = vld [vmem:[%s1014_s3 + $0xa8] sm:$0xff]  ;;  %v167_v14 = vld [vmem:[%s1014_s3 + $0xb8] sm:$0xff]  ;;  %v494_v15 = vpack.c.bf16 %v162_v10, %v160_v9 }
  0x13   :  { %v474_v16 = vpack.c.bf16 %v57_v12, %v55_v7  ;;  %v496_v17 = vpack.c.bf16 %v167_v14, %v165_v13  ;;  %v164_v18 = vld [vmem:[%s1014_s3 + $0xa0] sm:$0xff]  ;;  %v166_v19 = vld [vmem:[%s1014_s3 + $0xb0] sm:$0xff]  ;;  %v169_v20 = vld [vmem:[%s1014_s3 + $0xc8] sm:$0xff] }
  0x14   :  { %487 = vmatpush1.bf16.msra.mxu1 %v486_v57  ;;  %v171_v21 = vld [vmem:[%s1014_s3 + $0xd8] sm:$0xff]  ;;  %v498_v22 = vpack.c.bf16 %v166_v19, %v164_v18  ;;  %v26_v23 = vld [vmem:[%s1015_s0] sm:$0xff]  ;;  %v170_v26 = vld [vmem:[%s1014_s3 + $0xd0] sm:$0xff] }
  0x15   :  { %463 = vmatpush1.bf16.msra.mxu0 %v462_v46  ;;  %489 = vmatprep.subr.bf16.mxu1 %v488_v60  ;;  %v500_v24 = vpack.c.bf16 %v171_v21, %v169_v20  ;;  %v168_v25 = vld [vmem:[%s1014_s3 + $0xc0] sm:$0xff]  ;;  %v173_v27 = vld [vmem:[%s1014_s3 + $0xe8] sm:$0xff]  ;;  %v175_v28 = vld [vmem:[%s1014_s3 + $0xf8] sm:$0xff] }
  0x16   :  { %465 = vmatprep.subr.bf16.mxu0 %v464_v51  ;;  %v502_v29 = vpack.c.bf16 %v170_v26, %v168_v25  ;;  %v504_v30 = vpack.c.bf16 %v175_v28, %v173_v27  ;;  %v172_v31 = vld [vmem:[%s1014_s3 + $0xe0] sm:$0xff]  ;;  %v174_v32 = vld [vmem:[%s1014_s3 + $0xf0] sm:$0xff]  ;;  %v177_v33 = vld [vmem:[%s1014_s3 + $0x108] sm:$0xff] }
  0x17   :  { %v179_v34 = vld [vmem:[%s1014_s3 + $0x118] sm:$0xff]  ;;  %v506_v35 = vpack.c.bf16 %v174_v32, %v172_v31  ;;  %v176_v37 = vld [vmem:[%s1014_s3 + $0x100] sm:$0xff]  ;;  %v178_v38 = vld [vmem:[%s1014_s3 + $0x110] sm:$0xff] }
  0x18   :  { %491 = vmatpush1.bf16.msra.mxu1 %v490_v5  ;;  %v508_v36 = vpack.c.bf16 %v179_v34, %v177_v33  ;;  %v181_v39 = vld [vmem:[%s1014_s3 + $0x128] sm:$0xff]  ;;  %v183_v40 = vld [vmem:[%s1014_s3 + $0x138] sm:$0xff]  ;;  %v510_v41 = vpack.c.bf16 %v178_v38, %v176_v37  ;;  %v180_v43 = vld [vmem:[%s1014_s3 + $0x120] sm:$0xff] }
  0x19   :  { %467 = vmatpush1.bf16.msra.mxu0 %v466_v58  ;;  %493 = vmatprep.subr.bf16.mxu1 %v492_v8  ;;  %v512_v42 = vpack.c.bf16 %v183_v40, %v181_v39  ;;  %v182_v44 = vld [vmem:[%s1014_s3 + $0x130] sm:$0xff]  ;;  %v185_v45 = vld [vmem:[%s1014_s3 + $0x148] sm:$0xff]  ;;  %v187_v46 = vld [vmem:[%s1014_s3 + $0x158] sm:$0xff] }
  0x1a   :  { %469 = vmatprep.subr.bf16.mxu0 %v468_v63  ;;  %v514_v47 = vpack.c.bf16 %v182_v44, %v180_v43  ;;  %v516_v48 = vpack.c.bf16 %v187_v46, %v185_v45  ;;  %v184_v49 = vld [vmem:[%s1014_s3 + $0x140] sm:$0xff]  ;;  %v186_v50 = vld [vmem:[%s1014_s3 + $0x150] sm:$0xff]  ;;  %v189_v51 = vld [vmem:[%s1014_s3 + $0x168] sm:$0xff] }
  0x1b   :  { %v191_v52 = vld [vmem:[%s1014_s3 + $0x178] sm:$0xff]  ;;  %v518_v53 = vpack.c.bf16 %v186_v50, %v184_v49  ;;  %v188_v55 = vld [vmem:[%s1014_s3 + $0x160] sm:$0xff]  ;;  %v190_v56 = vld [vmem:[%s1014_s3 + $0x170] sm:$0xff] }
  0x1c   :  { %495 = vmatpush1.bf16.msra.mxu1 %v494_v15  ;;  %v520_v54 = vpack.c.bf16 %v191_v52, %v189_v51  ;;  %v193_v57 = vld [vmem:[%s1014_s3 + $0x188] sm:$0xff]  ;;  %v195_v58 = vld [vmem:[%s1014_s3 + $0x198] sm:$0xff]  ;;  %v522_v59 = vpack.c.bf16 %v190_v56, %v188_v55  ;;  %v192_v61 = vld [vmem:[%s1014_s3 + $0x180] sm:$0xff] }
  0x1d   :  { %471 = vmatpush1.bf16.msra.mxu0 %v470_v6  ;;  %497 = vmatprep.subr.bf16.mxu1 %v496_v17  ;;  %v524_v60 = vpack.c.bf16 %v195_v58, %v193_v57  ;;  %v194_v62 = vld [vmem:[%s1014_s3 + $0x190] sm:$0xff]  ;;  %v197_v63 = vld [vmem:[%s1014_s3 + $0x1a8] sm:$0xff]  ;;  %v199_v0 = vld [vmem:[%s1014_s3 + $0x1b8] sm:$0xff]  ;;  %v61_v57 = vlaneseq }
  0x1e   :  { %473 = vmatprep.subr.bf16.mxu0 %v472_v11  ;;  %v526_v1 = vpack.c.bf16 %v194_v62, %v192_v61  ;;  %v528_v2 = vpack.c.bf16 %v199_v0, %v197_v63  ;;  %v196_v3 = vld [vmem:[%s1014_s3 + $0x1a0] sm:$0xff]  ;;  %v198_v4 = vld [vmem:[%s1014_s3 + $0x1b0] sm:$0xff]  ;;  %v201_v5 = vld [vmem:[%s1014_s3 + $0x1c8] sm:$0xff] }
  0x1f   :  { %v203_v6 = vld [vmem:[%s1014_s3 + $0x1d8] sm:$0xff]  ;;  %v530_v7 = vpack.c.bf16 %v198_v4, %v196_v3  ;;  %v200_v9 = vld [vmem:[%s1014_s3 + $0x1c0] sm:$0xff]  ;;  %v202_v10 = vld [vmem:[%s1014_s3 + $0x1d0] sm:$0xff]  ;;  %v62_v58 = vshrl.u32 %v61_v57, 7 }
  0x20   :  { %499 = vmatpush1.bf16.msra.mxu1 %v498_v22  ;;  %v532_v8 = vpack.c.bf16 %v203_v6, %v201_v5  ;;  %v534_v11 = vpack.c.bf16 %v202_v10, %v200_v9  ;;  %v205_v12 = vld [vmem:[%s1014_s3 + $0x1e8] sm:$0xff]  ;;  %v207_v13 = vld [vmem:[%s1014_s3 + $0x1f8] sm:$0xff]  ;;  %v204_v15 = vld [vmem:[%s1014_s3 + $0x1e0] sm:$0xff] }
  0x21   :  { %475 = vmatpush1.bf16.msra.mxu0 %v474_v16  ;;  %501 = vmatprep.subr.bf16.mxu1 %v500_v24  ;;  %v536_v14 = vpack.c.bf16 %v207_v13, %v205_v12  ;;  %v206_v16 = vld [vmem:[%s1014_s3 + $0x1f0] sm:$0xff]  ;;  %v309_v18 = vld [vmem:[%s1016_s5 + $0x80] sm:$0xff]  ;;  %v310_v19 = vld [vmem:[%s1016_s5 + $0x88] sm:$0xff]  ;;  %v67_v61 = vsub.s32 1, %v62_v58 }
  0x22   :  { %v538_v17 = vpack.c.bf16 %v206_v16, %v204_v15  ;;  %v293_v20 = vld [vmem:[%s1016_s5] sm:$0xff]  ;;  %v540_v21 = vpack.c.bf16 %v310_v19, %v309_v18  ;;  %v294_v22 = vld [vmem:[%s1016_s5 + $0x8] sm:$0xff]  ;;  %v312_v24 = vld [vmem:[%s1016_s5 + $0x98] sm:$0xff] }
  0x23   :  { %v542_v25 = vpack.c.bf16 %v294_v22, %v293_v20  ;;  %v295_v27 = vld [vmem:[%s1016_s5 + $0x10] sm:$0xff]  ;;  %v296_v28 = vld [vmem:[%s1016_s5 + $0x18] sm:$0xff]  ;;  %v297_v33 = vld [vmem:[%s1016_s5 + $0x20] sm:$0xff] }
  0x24   :  { %136 = vmatmul.mubr.f32.vlgmr.msra.gmra.mrb[0].mxu0 %v26_v23  ;;  %503 = vmatpush1.bf16.msra.mxu1 %v502_v29  ;;  %v311_v23 = vld [vmem:[%s1016_s5 + $0x90] sm:$0xff]  ;;  %v313_v29 = vld [vmem:[%s1016_s5 + $0xa0] sm:$0xff]  ;;  %v546_v31 = vpack.c.bf16 %v296_v28, %v295_v27  ;;  %v298_v34 = vld [vmem:[%s1016_s5 + $0x28] sm:$0xff] }
  0x25   :  { %505 = vmatprep.subr.bf16.mxu1 %v504_v30  ;;  %v544_v26 = vpack.c.bf16 %v312_v24, %v311_v23  ;;  %541 = vmatprep.subr.bf16.mxu0 %v540_v21  ;;  %v314_v30 = vld [vmem:[%s1016_s5 + $0xa8] sm:$0xff]  ;;  %v550_v37 = vpack.c.bf16 %v298_v34, %v297_v33  ;;  %v299_v39 = vld [vmem:[%s1016_s5 + $0x30] sm:$0xff]  ;;  %v300_v40 = vld [vmem:[%s1016_s5 + $0x38] sm:$0xff] }
  0x26   :  { %543 = vmatpush3.bf16.msra.mxu0 %v542_v25  ;;  %v548_v32 = vpack.c.bf16 %v314_v30, %v313_v29  ;;  %v554_v43 = vpack.c.bf16 %v300_v40, %v299_v39  ;;  %v301_v45 = vld [vmem:[%s1016_s5 + $0x40] sm:$0xff]  ;;  %v302_v46 = vld [vmem:[%s1016_s5 + $0x48] sm:$0xff]  ;;  %v303_v51 = vld [vmem:[%s1016_s5 + $0x50] sm:$0xff] }
  0x27   :  { %545 = vmatprep.subr.bf16.mxu0 %v544_v26  ;;  %v558_v49 = vpack.c.bf16 %v302_v46, %v301_v45  ;;  %v304_v52 = vld [vmem:[%s1016_s5 + $0x58] sm:$0xff]  ;;  %v305_v6 = vld [vmem:[%s1016_s5 + $0x60] sm:$0xff]  ;;  %v323_v9 = vld [vmem:[%s1016_s5 + $0xf0] sm:$0xff] }
  0x28   :  { %507 = vmatpush1.bf16.msra.mxu1 %v506_v35  ;;  %v315_v35 = vld [vmem:[%s1016_s5 + $0xb0] sm:$0xff]  ;;  %v562_v55 = vpack.c.bf16 %v304_v52, %v303_v51  ;;  %v324_v10 = vld [vmem:[%s1016_s5 + $0xf8] sm:$0xff]  ;;  %v208_v15 = vld [vmem:[%s1018_s4] sm:$0x3] }
  0x29   :  { %509 = vmatprep.subr.bf16.mxu1 %v508_v36  ;;  %v316_v36 = vld [vmem:[%s1016_s5 + $0xb8] sm:$0xff]  ;;  %v307_v12 = vld [vmem:[%s1016_s5 + $0x70] sm:$0xff]  ;;  %v408_v25 = vld [vmem:[%s1019_s6] ss:$0 sm:$0xff] }
  0x2a   :  { %547 = vmatpush3.bf16.msra.mxu0 %v546_v31  ;;  %v552_v38 = vpack.c.bf16 %v316_v36, %v315_v35  ;;  %v308_v13 = vld [vmem:[%s1016_s5 + $0x78] sm:$0xff] }
  0x2b   :  { %549 = vmatprep.subr.bf16.mxu0 %v548_v32 }
  0x2c   :  { %511 = vmatpush1.bf16.msra.mxu1 %v510_v41  ;;  %v317_v41 = vld [vmem:[%s1016_s5 + $0xc0] sm:$0xff] }
  0x2d   :  { %513 = vmatprep.subr.bf16.mxu1 %v512_v42  ;;  %v318_v42 = vld [vmem:[%s1016_s5 + $0xc8] sm:$0xff] }
  0x2e   :  { %551 = vmatpush3.bf16.msra.mxu0 %v550_v37  ;;  %v556_v44 = vpack.c.bf16 %v318_v42, %v317_v41 }
  0x2f   :  { %553 = vmatprep.subr.bf16.mxu0 %v552_v38 }
  0x30   :  { %515 = vmatpush1.bf16.msra.mxu1 %v514_v47  ;;  %v319_v47 = vld [vmem:[%s1016_s5 + $0xd0] sm:$0xff] }
  0x31   :  { %517 = vmatprep.subr.bf16.mxu1 %v516_v48  ;;  %v320_v48 = vld [vmem:[%s1016_s5 + $0xd8] sm:$0xff] }
  0x32   :  { %555 = vmatpush3.bf16.msra.mxu0 %v554_v43  ;;  %v560_v50 = vpack.c.bf16 %v320_v48, %v319_v47 }
  0x33   :  { %557 = vmatprep.subr.bf16.mxu0 %v556_v44 }
  0x34   :  { %519 = vmatpush1.bf16.msra.mxu1 %v518_v53  ;;  %v321_v53 = vld [vmem:[%s1016_s5 + $0xe0] sm:$0xff] }
  0x35   :  { %521 = vmatprep.subr.bf16.mxu1 %v520_v54  ;;  %v322_v54 = vld [vmem:[%s1016_s5 + $0xe8] sm:$0xff] }
  0x36   :  { %559 = vmatpush3.bf16.msra.mxu0 %v558_v49  ;;  %v564_v56 = vpack.c.bf16 %v322_v54, %v321_v53 }
  0x37   :  { %561 = vmatprep.subr.bf16.mxu0 %v560_v50 }
  0x38   :  { %523 = vmatpush1.bf16.msra.mxu1 %v522_v59  ;;  %v63_v59 = vsub.s32 0, %v62_v58 }
  0x39   :  { %525 = vmatprep.subr.bf16.mxu1 %v524_v60  ;;  %v59_v60 = vld [vmem:[%s1017_s2] sm:$0x3] }
  0x3a   :  { %563 = vmatpush3.bf16.msra.mxu0 %v562_v55  ;;  %v64_v62 = vrot.slane %v59_v60, %v63_v59  ;;  %v68_v63 = vrot.slane %v59_v60, %v67_v61  ;;  %v213_v16 = vrot.slane %v208_v15, %v63_v59 }
  0x3b   :  { %565 = vmatprep.subr.bf16.mxu0 %v564_v56 }
  0x3c   :  { %527 = vmatpush1.bf16.msra.mxu1 %v526_v1 }
  0x3d   :  { %529 = vmatprep.subr.bf16.mxu1 %v528_v2 }
  0x40   :  { %531 = vmatpush1.bf16.msra.mxu1 %v530_v7  ;;  %v306_v7 = vld [vmem:[%s1016_s5 + $0x68] sm:$0xff] }
  0x41   :  { %533 = vmatprep.subr.bf16.mxu1 %v532_v8  ;;  %v566_v8 = vpack.c.bf16 %v306_v7, %v305_v6 }
  0x43   :  { %567 = vmatpush3.bf16.msra.mxu0 %v566_v8 }
  0x44   :  { %535 = vmatpush1.bf16.msra.mxu1 %v534_v11  ;;  %v568_v11 = vpack.c.bf16 %v324_v10, %v323_v9 }
  0x45   :  { %537 = vmatprep.subr.bf16.mxu1 %v536_v14  ;;  %v570_v14 = vpack.c.bf16 %v308_v13, %v307_v12 }
  0x46   :  { %569 = vmatprep.subr.bf16.mxu0 %v568_v11 }
  0x47   :  { %571 = vmatpush3.bf16.msra.mxu0 %v570_v14 }
  0x48   :  { %539 = vmatpush1.bf16.msra.mxu1 %v538_v17  ;;  %v217_v17 = vrot.slane %v208_v15, %v67_v61 }
  0xf7   :  { %v137_v0 = vpop.f32.mrb[0].mxu0 }
  0xf8   :  { %v138_v1 = vadd.f32 %v137_v0, %v64_v62  ;;  %v139_v2 = vpop.f32.mrb[1].mxu0 }
  0xf9   :  { %v140_v3 = vadd.f32 %v139_v2, %v68_v63 }
  0xfa   :  { %v142_v5 = vmax.f32 %v138_v1, 0.0 }
  0xfb   :  { %v143_v4 = vmax.f32 %v140_v3, 0.0 }
  0xfd   :  { %284 = vmatprep.mubr.f32.mxu1 %v143_v4 }
  0xfe   :  { %285 = vmatmul.mubr.f32.vlgmr.msra.gmra.mrb[0].mxu1 %v142_v5 }
 0x1d1   :  { %v286_v18 = vpop.f32.mrb[0].mxu1 }
 0x1d2   :  { %v287_v19 = vadd.f32 %v286_v18, %v213_v16  ;;  %v288_v20 = vpop.f32.mrb[1].mxu1 }
 0x1d3   :  { %v289_v21 = vadd.f32 %v288_v20, %v217_v17 }
 0x1d4   :  { %v291_v23 = vmax.f32 %v287_v19, 0.0 }
 0x1d5   :  { %v292_v22 = vmax.f32 %v289_v21, 0.0 }
 0x1d7   :  { %396 = vmatprep.mubr.f32.mxu0 %v292_v22 }
 0x1d8   :  { %397 = vmatmul.mubr.f32.vlgmr.msra.gmra.mrb[2].mxu0 %v291_v23 }
 0x2ab   :  { %v441_v24 = vpop.f32.mrb[2].mxu0 }
 0x2ac   :  { %v442_v26 = vpop.f32.mrb[3].mxu0 }
 0x2ad   :  { %v443_v27 = vadd.f32 %v442_v26, %v441_v24 }
 0x2af   :  { %v399_v28 = vadd.f32 %v443_v27, %v408_v25 }
 0x2b1   :  { %403 = vst.msk [vmem:[%s1020_s7] sm:$0xff] %vm402_vm0, %v399_v28 }

</bundles_post_ra>
